<compile_context>
chip_gen: v5e
topology: v5e:2x2
jax: 0.10.0
libtpu: 0.0.40
codegen_flags: <defaults>
</compile_context>

<pallas_src>
import functools
import math

import jax
import jax.numpy as jnp
from jax import lax
from jax.experimental import pallas as pl
from jax.experimental.pallas import tpu as pltpu


def _farcon_loss_kernel(
    # reconstruction family: probabilities and targets
    xr1_ref, xr2_ref, xo_ref, xc_ref,
    sr1_ref, sr2_ref, so_ref, sc_ref,
    # latent family: mu / logvar for (x1, s1, x2, s2)
    mx1_ref, lx1_ref, ms1_ref, ls1_ref,
    mx2_ref, lx2_ref, ms2_ref, ls2_ref,
    # prediction family
    yh1_ref, yh2_ref, y_ref,
    # outputs
    ypred_ref, part_ref,
    *, n_true):
    """One independent batch tile -> per-tile partial sums + a y_pred block.

    part_ref is a (1, 8, 128) block; row k holds partial-sum k broadcast over
    the 128 lanes:
      [0] sum BCE(x_recon, x)          (both views)
      [1] sum BCE(s_recon, s)          (both views)
      [2] sum (1 + lv - exp(lv) - mu^2) over the 4 latent heads
      [3] sum BCEWithLogits(y_hat1, y) + BCEWithLogits(y_hat2, y)  (valid rows)
      [4..7] raw symmetric-KL sums: d_zx, d_zs, d_xs_ori, d_xs_cont
    """
    step = pl.program_id(0)

    # ---- reconstruction BCE on probabilities (torch.nn.BCELoss, log clamp) ---
    # Zero-padded rows (p = t = 0) contribute exactly 0, so no batch mask here.
    def bce(p, t):
        logp = jnp.maximum(jnp.log(p), -100.0)
        log1mp = jnp.maximum(jnp.log(1.0 - p), -100.0)
        return -(t * logp + (1.0 - t) * log1mp)

    bce_x = bce(xr1_ref[...], xo_ref[...]) + bce(xr2_ref[...], xc_ref[...])
    bce_s = bce(sr1_ref[...], so_ref[...]) + bce(sr2_ref[...], sc_ref[...])
    s_recon_x = jnp.sum(bce_x)
    s_recon_s = jnp.sum(bce_s)

    # ---- latent statistics ----------------------------------------------------
    mx1, ms1 = mx1_ref[...], ms1_ref[...]
    mx2, ms2 = mx2_ref[...], ms2_ref[...]
    lx1, ls1 = lx1_ref[...], ls1_ref[...]
    lx2, ls2 = lx2_ref[...], ls2_ref[...]
    # exp(lv) / exp(-lv): one EUP op each, exact.  Padded rows give var=inv=1.
    vx1, vs1, vx2, vs2 = jnp.exp(lx1), jnp.exp(ls1), jnp.exp(lx2), jnp.exp(ls2)
    ix1, is1, ix2, is2 = jnp.exp(-lx1), jnp.exp(-ls1), jnp.exp(-lx2), jnp.exp(-ls2)

    # VAE KL raw term (padded rows: 1 + 0 - 1 - 0 = 0)
    kl_term = ((1.0 + lx1 - vx1 - mx1 * mx1) + (1.0 + ls1 - vs1 - ms1 * ms1)
               + (1.0 + lx2 - vx2 - mx2 * mx2) + (1.0 + ls2 - vs2 - ms2 * ms2))
    s_kl = jnp.sum(kl_term)

    # Symmetric exact diagonal-Gaussian KLD, fused closed form:
    #   0.5*(KL(p||q)+KL(q||p)) = 0.25*sum(vp/vq + vq/vp + (mup-muq)^2*(1/vp+1/vq) - 2)/(n*k)
    # (the log-det terms cancel).  Padded rows contribute 1 + 1 + 0 - 2 = 0.
    def sym(ma, va, ia, mb, vb, ib):
        d = ma - mb
        return va * ib + vb * ia + d * d * (ia + ib) - 2.0

    s_dzx = jnp.sum(sym(mx1, vx1, ix1, mx2, vx2, ix2))
    s_dzs = jnp.sum(sym(ms1, vs1, is1, ms2, vs2, is2))
    s_dxo = jnp.sum(sym(mx1, vx1, ix1, ms1, vs1, is1))
    s_dxc = jnp.sum(sym(mx2, vx2, ix2, ms2, vs2, is2))

    # ---- prediction BCE-with-logits + y_pred ---------------------------------
    yh1 = yh1_ref[...]
    yh2 = yh2_ref[...]
    yt = y_ref[...]
    tile_n, dy = yh1.shape

    def bce_logits(z, t):  # numerically stable BCEWithLogitsLoss form
        return jnp.maximum(z, 0.0) - z * t + jnp.log1p(jnp.exp(-jnp.abs(z)))

    # zero-padded rows would contribute log(2) here -> mask on the true batch.
    rid = step * tile_n + lax.broadcasted_iota(jnp.int32, (tile_n, dy), 0)
    valid = (rid < n_true).astype(jnp.float32)
    s_pred = jnp.sum((bce_logits(yh1, yt) + bce_logits(yh2, yt)) * valid)

    # reference: y_pred = ones_like(y_hat1); y_pred[y_hat1 < 0] = 0  (0 -> 1)
    ypred_ref[...] = jnp.where(yh1 < 0.0, 0.0, 1.0).astype(jnp.float32)

    # ---- emit per-tile partial sums (independent per grid step -> "parallel") -
    sums = (s_recon_x, s_recon_s, s_kl, s_pred, s_dzx, s_dzs, s_dxo, s_dxc)
    row_id = lax.broadcasted_iota(jnp.int32, (1, 8, 128), 1)
    blk = jnp.zeros((1, 8, 128), jnp.float32)
    for k, v in enumerate(sums):
        blk = jnp.where(row_id == k, v, blk)
    part_ref[...] = blk


def _choose_batch_tile(n, row_bytes):
    """Batch tile: <=512 rows (~85%+ of HBM roofline), shrink for very wide rows
    so a double-buffered tile working set stays well inside v7x's 64 MiB VMEM;
    ragged batches are zero-padded up to a multiple of the tile."""
    cap = 512
    while cap > 128 and 3 * cap * row_bytes > 12 * (1 << 20):
        cap //= 2
    for t in (512, 256, 128):
        if t <= cap and n % t == 0:
            return t
    if n > cap:
        return cap                       # large ragged batch: pad to multiple of cap
    return max(8, ((n + 7) // 8) * 8)    # small batch: one (8-aligned) tile


def farcon_vae_loss(out1, out2, x_ori, x_cont, s_ori, s_cont, y,
                    *, alpha=1.0, beta=0.2, gamma=0.0,
                    fade_in=True, beta_anneal=True,
                    current_iter=0, total_train_it=1000):
    """Training-branch forward of FarconVAELoss (data_name != 'yaleb', kernel='g').

    out{1,2} = ((zx, zs), (x_recon, s_recon), (mu_x, logvar_x, mu_s, logvar_s), y_hat)
    Returns (recon_loss, kl_loss, pred_loss, cont_loss, sr_loss, y_pred).
    """
    (_, (x_rec1, s_rec1), (mu_x1, lv_x1, mu_s1, lv_s1), y_hat1) = out1
    (_, (x_rec2, s_rec2), (mu_x2, lv_x2, mu_s2, lv_s2), y_hat2) = out2

    f32 = jnp.float32
    n, dx = x_ori.shape
    ds = s_ori.shape[1]
    dz = mu_x1.shape[1]
    dy = y_hat1.shape[1]
    assert mu_x1.shape == mu_s1.shape, "cont_xs=1 path requires equal latent dims"

    w_total = 4 * dx + 4 * ds + 8 * dz + 3 * dy
    row_bytes = 4 * (w_total + dy)           # all input rows + y_pred output row
    tile_n = _choose_batch_tile(n, row_bytes)
    num_tiles = pl.cdiv(n, tile_n)
    n_pad = num_tiles * tile_n

    def prep(a):
        a = a.astype(f32)
        if n_pad != n:
            a = jnp.pad(a, ((0, n_pad - n), (0, 0)))
        return a

    inputs = [x_rec1, x_rec2, x_ori, x_cont,
              s_rec1, s_rec2, s_ori, s_cont,
              mu_x1, lv_x1, mu_s1, lv_s1,
              mu_x2, lv_x2, mu_s2, lv_s2,
              y_hat1, y_hat2, y]
    inputs = [prep(a) for a in inputs]
    widths = [dx] * 4 + [ds] * 4 + [dz] * 8 + [dy] * 3

    in_specs = [pl.BlockSpec((tile_n, w), lambda i: (i, 0)) for w in widths]

    # Explicit VMEM budget: double-buffered input tiles + temps, capped at 32 MiB
    # (v7x has only 64 MiB physical VMEM; v5e/v6e have 128 MiB).
    vmem_limit = int(min(32 * (1 << 20), max(8 * (1 << 20), 6 * tile_n * row_bytes)))

    kernel = functools.partial(_farcon_loss_kernel, n_true=n)

    y_pred_pad, partials = pl.pallas_call(
        kernel,
        grid=(num_tiles,),
        out_shape=(
            jax.ShapeDtypeStruct((n_pad, dy), f32),            # y_pred (padded)
            jax.ShapeDtypeStruct((num_tiles, 8, 128), f32),     # per-tile partial sums
        ),
        in_specs=in_specs,
        out_specs=(
            pl.BlockSpec((tile_n, dy), lambda i: (i, 0)),
            pl.BlockSpec((1, 8, 128), lambda i: (i, 0, 0)),
        ),
        compiler_params=pltpu.CompilerParams(
            dimension_semantics=("parallel",),      # tiles are fully independent
            vmem_limit_bytes=vmem_limit,
        ),
    )(*inputs)

    # ---- reduce per-tile partials + scalar finalize (tiny; matches PyTorch) ---
    sums = partials[:, :, 0].sum(axis=0)            # (8,)

    temperature = 1.0
    if fade_in and current_iter < total_train_it // 10:
        temperature = 1.0 / (1.0 + math.exp(-(current_iter - total_train_it // 20)))
    beta_temperature = 1.0
    if beta_anneal and current_iter < total_train_it // 10:
        beta_temperature = 1.0 / (1.0 + math.exp(-(current_iter - total_train_it // 20)))

    recon_loss = sums[0] / (2.0 * n * dx) + sums[1] / (2.0 * n * ds)
    kl_loss = (-0.5 * sums[2] / (4.0 * n * dz)) * beta_temperature * beta
    pred_loss = sums[3] / (2.0 * n * dy)
    d_zx = 0.25 * sums[4] / (n * dz)
    d_zs = 0.25 * sums[5] / (n * dz)
    d_xs_ori = 0.25 * sums[6] / (n * dz)
    d_xs_cont = 0.25 * sums[7] / (n * dz)
    cont_raw = d_zx + jnp.exp(-d_zs) + jnp.exp(-d_xs_ori) + jnp.exp(-d_xs_cont)
    cont_loss = cont_raw * temperature * alpha
    sr_loss = jnp.float32(0.0) * (temperature * gamma)  # TODO(synk): gamma!=0 path
    y_pred = y_pred_pad[:n]
    return recon_loss, kl_loss, pred_loss, cont_loss, sr_loss, y_pred


if __name__ == "__main__":
    # small, forward-consistent shapes
    N, DX, DS, DZ, DY = 8, 16, 4, 16, 1

    key = jax.random.PRNGKey(0)
    ks = jax.random.split(key, 12)
    f32 = jnp.float32

    def sig(k, shape):
        return jax.nn.sigmoid(jax.random.normal(k, shape, dtype=f32))

    x_ori = jax.random.uniform(ks[0], (N, DX), dtype=f32)
    x_cont = jax.random.uniform(ks[1], (N, DX), dtype=f32)
    s_ori = (jax.random.uniform(ks[2], (N, DS), dtype=f32) > 0.5).astype(f32)
    s_cont = (jax.random.uniform(ks[3], (N, DS), dtype=f32) > 0.5).astype(f32)
    y = (jax.random.uniform(ks[4], (N, DY), dtype=f32) > 0.5).astype(f32)

    def make_out(kb):
        kk = jax.random.split(kb, 9)
        zx = jax.random.normal(kk[0], (N, DZ), dtype=f32)
        zs = jax.random.normal(kk[1], (N, DZ), dtype=f32)
        x_rec = sig(kk[2], (N, DX))
        s_rec = sig(kk[3], (N, DS))
        mu_x = jax.random.normal(kk[4], (N, DZ), dtype=f32)
        lv_x = 0.3 * jax.random.normal(kk[5], (N, DZ), dtype=f32)
        mu_s = jax.random.normal(kk[6], (N, DZ), dtype=f32)
        lv_s = 0.3 * jax.random.normal(kk[7], (N, DZ), dtype=f32)
        y_hat = jax.random.normal(kk[8], (N, DY), dtype=f32)
        return ((zx, zs), (x_rec, s_rec), (mu_x, lv_x, mu_s, lv_s), y_hat)

    out1 = make_out(ks[10])
    out2 = make_out(ks[11])

    results = farcon_vae_loss(
        out1, out2, x_ori, x_cont, s_ori, s_cont, y,
        alpha=1.0, beta=0.2, gamma=0.0,
        fade_in=True, beta_anneal=True,
        current_iter=10, total_train_it=1000,
    )
    results = jax.block_until_ready(results)
    recon_loss, kl_loss, pred_loss, cont_loss, sr_loss, y_pred = results
    assert y_pred.shape == (N, DY)
    assert all(bool(jnp.isfinite(r).all()) for r in results)
    print("KERNEL_OK")
</pallas_src>

<mosaic_0001>
module attributes {stable_mosaic.version = 11 : i64} {
  func.func @_farcon_loss_kernel(%arg0: i32, %arg1: memref<8x16xf32, #tpu.memory_space<vmem>>, %arg2: memref<8x16xf32, #tpu.memory_space<vmem>>, %arg3: memref<8x16xf32, #tpu.memory_space<vmem>>, %arg4: memref<8x16xf32, #tpu.memory_space<vmem>>, %arg5: memref<8x4xf32, #tpu.memory_space<vmem>>, %arg6: memref<8x4xf32, #tpu.memory_space<vmem>>, %arg7: memref<8x4xf32, #tpu.memory_space<vmem>>, %arg8: memref<8x4xf32, #tpu.memory_space<vmem>>, %arg9: memref<8x16xf32, #tpu.memory_space<vmem>>, %arg10: memref<8x16xf32, #tpu.memory_space<vmem>>, %arg11: memref<8x16xf32, #tpu.memory_space<vmem>>, %arg12: memref<8x16xf32, #tpu.memory_space<vmem>>, %arg13: memref<8x16xf32, #tpu.memory_space<vmem>>, %arg14: memref<8x16xf32, #tpu.memory_space<vmem>>, %arg15: memref<8x16xf32, #tpu.memory_space<vmem>>, %arg16: memref<8x16xf32, #tpu.memory_space<vmem>>, %arg17: memref<8x1xf32, #tpu.memory_space<vmem>>, %arg18: memref<8x1xf32, #tpu.memory_space<vmem>>, %arg19: memref<8x1xf32, #tpu.memory_space<vmem>>, %arg20: memref<8x1xf32, #tpu.memory_space<vmem>>, %arg21: memref<1x8x128xf32, #tpu.memory_space<vmem>>) attributes {dimension_semantics = [#tpu.dimension_semantics<parallel>], iteration_bounds = array<i64: 1>, scalar_prefetch = 0 : i64, scratch_operands = 0 : i64, tpu.core_type = #tpu.core_type<tc>, window_params = [{transform_indices = @transform_0, window_bounds = array<i64: 8, 16>}, {transform_indices = @transform_1, window_bounds = array<i64: 8, 16>}, {transform_indices = @transform_2, window_bounds = array<i64: 8, 16>}, {transform_indices = @transform_3, window_bounds = array<i64: 8, 16>}, {transform_indices = @transform_4, window_bounds = array<i64: 8, 4>}, {transform_indices = @transform_5, window_bounds = array<i64: 8, 4>}, {transform_indices = @transform_6, window_bounds = array<i64: 8, 4>}, {transform_indices = @transform_7, window_bounds = array<i64: 8, 4>}, {transform_indices = @transform_8, window_bounds = array<i64: 8, 16>}, {transform_indices = @transform_9, window_bounds = array<i64: 8, 16>}, {transform_indices = @transform_10, window_bounds = array<i64: 8, 16>}, {transform_indices = @transform_11, window_bounds = array<i64: 8, 16>}, {transform_indices = @transform_12, window_bounds = array<i64: 8, 16>}, {transform_indices = @transform_13, window_bounds = array<i64: 8, 16>}, {transform_indices = @transform_14, window_bounds = array<i64: 8, 16>}, {transform_indices = @transform_15, window_bounds = array<i64: 8, 16>}, {transform_indices = @transform_16, window_bounds = array<i64: 8, 1>}, {transform_indices = @transform_17, window_bounds = array<i64: 8, 1>}, {transform_indices = @transform_18, window_bounds = array<i64: 8, 1>}, {transform_indices = @transform_19, window_bounds = array<i64: 8, 1>}, {transform_indices = @transform_20, window_bounds = array<i64: 1, 8, 128>}]} {
    %c0 = arith.constant 0 : index
    %c0_0 = arith.constant 0 : index
    %0 = vector.load %arg1[%c0, %c0_0] : memref<8x16xf32, #tpu.memory_space<vmem>>, vector<8x16xf32>
    %c0_1 = arith.constant 0 : index
    %c0_2 = arith.constant 0 : index
    %1 = vector.load %arg3[%c0_1, %c0_2] : memref<8x16xf32, #tpu.memory_space<vmem>>, vector<8x16xf32>
    %2 = math.log %0 : vector<8x16xf32>
    %cst = arith.constant -1.000000e+02 : f32
    %3 = vector.broadcast %cst : f32 to vector<8x16xf32>
    %4 = arith.maximumf %2, %3 : vector<8x16xf32>
    %cst_3 = arith.constant 1.000000e+00 : f32
    %5 = vector.broadcast %cst_3 : f32 to vector<8x16xf32>
    %6 = arith.subf %5, %0 : vector<8x16xf32>
    %7 = math.log %6 : vector<8x16xf32>
    %cst_4 = arith.constant -1.000000e+02 : f32
    %8 = vector.broadcast %cst_4 : f32 to vector<8x16xf32>
    %9 = arith.maximumf %7, %8 : vector<8x16xf32>
    %10 = arith.mulf %1, %4 : vector<8x16xf32>
    %cst_5 = arith.constant 1.000000e+00 : f32
    %11 = vector.broadcast %cst_5 : f32 to vector<8x16xf32>
    %12 = arith.subf %11, %1 : vector<8x16xf32>
    %13 = arith.mulf %12, %9 : vector<8x16xf32>
    %14 = arith.addf %10, %13 : vector<8x16xf32>
    %cst_6 = arith.constant 0.000000e+00 : f32
    %15 = vector.broadcast %cst_6 : f32 to vector<8x16xf32>
    %16 = arith.subf %15, %14 : vector<8x16xf32>
    %c0_7 = arith.constant 0 : index
    %c0_8 = arith.constant 0 : index
    %17 = vector.load %arg2[%c0_7, %c0_8] : memref<8x16xf32, #tpu.memory_space<vmem>>, vector<8x16xf32>
    %c0_9 = arith.constant 0 : index
    %c0_10 = arith.constant 0 : index
    %18 = vector.load %arg4[%c0_9, %c0_10] : memref<8x16xf32, #tpu.memory_space<vmem>>, vector<8x16xf32>
    %19 = math.log %17 : vector<8x16xf32>
    %cst_11 = arith.constant -1.000000e+02 : f32
    %20 = vector.broadcast %cst_11 : f32 to vector<8x16xf32>
    %21 = arith.maximumf %19, %20 : vector<8x16xf32>
    %cst_12 = arith.constant 1.000000e+00 : f32
    %22 = vector.broadcast %cst_12 : f32 to vector<8x16xf32>
    %23 = arith.subf %22, %17 : vector<8x16xf32>
    %24 = math.log %23 : vector<8x16xf32>
    %cst_13 = arith.constant -1.000000e+02 : f32
    %25 = vector.broadcast %cst_13 : f32 to vector<8x16xf32>
    %26 = arith.maximumf %24, %25 : vector<8x16xf32>
    %27 = arith.mulf %18, %21 : vector<8x16xf32>
    %cst_14 = arith.constant 1.000000e+00 : f32
    %28 = vector.broadcast %cst_14 : f32 to vector<8x16xf32>
    %29 = arith.subf %28, %18 : vector<8x16xf32>
    %30 = arith.mulf %29, %26 : vector<8x16xf32>
    %31 = arith.addf %27, %30 : vector<8x16xf32>
    %cst_15 = arith.constant 0.000000e+00 : f32
    %32 = vector.broadcast %cst_15 : f32 to vector<8x16xf32>
    %33 = arith.subf %32, %31 : vector<8x16xf32>
    %34 = arith.addf %16, %33 : vector<8x16xf32>
    %c0_16 = arith.constant 0 : index
    %c0_17 = arith.constant 0 : index
    %35 = vector.load %arg5[%c0_16, %c0_17] : memref<8x4xf32, #tpu.memory_space<vmem>>, vector<8x4xf32>
    %c0_18 = arith.constant 0 : index
    %c0_19 = arith.constant 0 : index
    %36 = vector.load %arg7[%c0_18, %c0_19] : memref<8x4xf32, #tpu.memory_space<vmem>>, vector<8x4xf32>
    %37 = math.log %35 : vector<8x4xf32>
    %cst_20 = arith.constant -1.000000e+02 : f32
    %38 = vector.broadcast %cst_20 : f32 to vector<8x4xf32>
    %39 = arith.maximumf %37, %38 : vector<8x4xf32>
    %cst_21 = arith.constant 1.000000e+00 : f32
    %40 = vector.broadcast %cst_21 : f32 to vector<8x4xf32>
    %41 = arith.subf %40, %35 : vector<8x4xf32>
    %42 = math.log %41 : vector<8x4xf32>
    %cst_22 = arith.constant -1.000000e+02 : f32
    %43 = vector.broadcast %cst_22 : f32 to vector<8x4xf32>
    %44 = arith.maximumf %42, %43 : vector<8x4xf32>
    %45 = arith.mulf %36, %39 : vector<8x4xf32>
    %cst_23 = arith.constant 1.000000e+00 : f32
    %46 = vector.broadcast %cst_23 : f32 to vector<8x4xf32>
    %47 = arith.subf %46, %36 : vector<8x4xf32>
    %48 = arith.mulf %47, %44 : vector<8x4xf32>
    %49 = arith.addf %45, %48 : vector<8x4xf32>
    %cst_24 = arith.constant 0.000000e+00 : f32
    %50 = vector.broadcast %cst_24 : f32 to vector<8x4xf32>
    %51 = arith.subf %50, %49 : vector<8x4xf32>
    %c0_25 = arith.constant 0 : index
    %c0_26 = arith.constant 0 : index
    %52 = vector.load %arg6[%c0_25, %c0_26] : memref<8x4xf32, #tpu.memory_space<vmem>>, vector<8x4xf32>
    %c0_27 = arith.constant 0 : index
    %c0_28 = arith.constant 0 : index
    %53 = vector.load %arg8[%c0_27, %c0_28] : memref<8x4xf32, #tpu.memory_space<vmem>>, vector<8x4xf32>
    %54 = math.log %52 : vector<8x4xf32>
    %cst_29 = arith.constant -1.000000e+02 : f32
    %55 = vector.broadcast %cst_29 : f32 to vector<8x4xf32>
    %56 = arith.maximumf %54, %55 : vector<8x4xf32>
    %cst_30 = arith.constant 1.000000e+00 : f32
    %57 = vector.broadcast %cst_30 : f32 to vector<8x4xf32>
    %58 = arith.subf %57, %52 : vector<8x4xf32>
    %59 = math.log %58 : vector<8x4xf32>
    %cst_31 = arith.constant -1.000000e+02 : f32
    %60 = vector.broadcast %cst_31 : f32 to vector<8x4xf32>
    %61 = arith.maximumf %59, %60 : vector<8x4xf32>
    %62 = arith.mulf %53, %56 : vector<8x4xf32>
    %cst_32 = arith.constant 1.000000e+00 : f32
    %63 = vector.broadcast %cst_32 : f32 to vector<8x4xf32>
    %64 = arith.subf %63, %53 : vector<8x4xf32>
    %65 = arith.mulf %64, %61 : vector<8x4xf32>
    %66 = arith.addf %62, %65 : vector<8x4xf32>
    %cst_33 = arith.constant 0.000000e+00 : f32
    %67 = vector.broadcast %cst_33 : f32 to vector<8x4xf32>
    %68 = arith.subf %67, %66 : vector<8x4xf32>
    %69 = arith.addf %51, %68 : vector<8x4xf32>
    %70 = vector.shape_cast %34 : vector<8x16xf32> to vector<1x8x16xf32>
    %cst_34 = arith.constant dense<0.000000e+00> : vector<1xf32>
    %71 = vector.multi_reduction <add>, %70, %cst_34 [1, 2] : vector<1x8x16xf32> to vector<1xf32>
    %72 = vector.shape_cast %71 : vector<1xf32> to vector<1x1x1xf32>
    %73 = vector.extract %72[0, 0, 0] : f32 from vector<1x1x1xf32>
    %74 = vector.shape_cast %69 : vector<8x4xf32> to vector<1x8x4xf32>
    %cst_35 = arith.constant dense<0.000000e+00> : vector<1xf32>
    %75 = vector.multi_reduction <add>, %74, %cst_35 [1, 2] : vector<1x8x4xf32> to vector<1xf32>
    %76 = vector.shape_cast %75 : vector<1xf32> to vector<1x1x1xf32>
    %77 = vector.extract %76[0, 0, 0] : f32 from vector<1x1x1xf32>
    %c0_36 = arith.constant 0 : index
    %c0_37 = arith.constant 0 : index
    %78 = vector.load %arg9[%c0_36, %c0_37] : memref<8x16xf32, #tpu.memory_space<vmem>>, vector<8x16xf32>
    %c0_38 = arith.constant 0 : index
    %c0_39 = arith.constant 0 : index
    %79 = vector.load %arg11[%c0_38, %c0_39] : memref<8x16xf32, #tpu.memory_space<vmem>>, vector<8x16xf32>
    %c0_40 = arith.constant 0 : index
    %c0_41 = arith.constant 0 : index
    %80 = vector.load %arg13[%c0_40, %c0_41] : memref<8x16xf32, #tpu.memory_space<vmem>>, vector<8x16xf32>
    %c0_42 = arith.constant 0 : index
    %c0_43 = arith.constant 0 : index
    %81 = vector.load %arg15[%c0_42, %c0_43] : memref<8x16xf32, #tpu.memory_space<vmem>>, vector<8x16xf32>
    %c0_44 = arith.constant 0 : index
    %c0_45 = arith.constant 0 : index
    %82 = vector.load %arg10[%c0_44, %c0_45] : memref<8x16xf32, #tpu.memory_space<vmem>>, vector<8x16xf32>
    %c0_46 = arith.constant 0 : index
    %c0_47 = arith.constant 0 : index
    %83 = vector.load %arg12[%c0_46, %c0_47] : memref<8x16xf32, #tpu.memory_space<vmem>>, vector<8x16xf32>
    %c0_48 = arith.constant 0 : index
    %c0_49 = arith.constant 0 : index
    %84 = vector.load %arg14[%c0_48, %c0_49] : memref<8x16xf32, #tpu.memory_space<vmem>>, vector<8x16xf32>
    %c0_50 = arith.constant 0 : index
    %c0_51 = arith.constant 0 : index
    %85 = vector.load %arg16[%c0_50, %c0_51] : memref<8x16xf32, #tpu.memory_space<vmem>>, vector<8x16xf32>
    %86 = math.exp %82 : vector<8x16xf32>
    %87 = math.exp %83 : vector<8x16xf32>
    %88 = math.exp %84 : vector<8x16xf32>
    %89 = math.exp %85 : vector<8x16xf32>
    %cst_52 = arith.constant 0.000000e+00 : f32
    %90 = vector.broadcast %cst_52 : f32 to vector<8x16xf32>
    %91 = arith.subf %90, %82 : vector<8x16xf32>
    %92 = math.exp %91 : vector<8x16xf32>
    %cst_53 = arith.constant 0.000000e+00 : f32
    %93 = vector.broadcast %cst_53 : f32 to vector<8x16xf32>
    %94 = arith.subf %93, %83 : vector<8x16xf32>
    %95 = math.exp %94 : vector<8x16xf32>
    %cst_54 = arith.constant 0.000000e+00 : f32
    %96 = vector.broadcast %cst_54 : f32 to vector<8x16xf32>
    %97 = arith.subf %96, %84 : vector<8x16xf32>
    %98 = math.exp %97 : vector<8x16xf32>
    %cst_55 = arith.constant 0.000000e+00 : f32
    %99 = vector.broadcast %cst_55 : f32 to vector<8x16xf32>
    %100 = arith.subf %99, %85 : vector<8x16xf32>
    %101 = math.exp %100 : vector<8x16xf32>
    %cst_56 = arith.constant 1.000000e+00 : f32
    %102 = vector.broadcast %cst_56 : f32 to vector<8x16xf32>
    %103 = arith.addf %102, %82 : vector<8x16xf32>
    %104 = arith.subf %103, %86 : vector<8x16xf32>
    %105 = arith.mulf %78, %78 : vector<8x16xf32>
    %106 = arith.subf %104, %105 : vector<8x16xf32>
    %cst_57 = arith.constant 1.000000e+00 : f32
    %107 = vector.broadcast %cst_57 : f32 to vector<8x16xf32>
    %108 = arith.addf %107, %83 : vector<8x16xf32>
    %109 = arith.subf %108, %87 : vector<8x16xf32>
    %110 = arith.mulf %79, %79 : vector<8x16xf32>
    %111 = arith.subf %109, %110 : vector<8x16xf32>
    %112 = arith.addf %106, %111 : vector<8x16xf32>
    %cst_58 = arith.constant 1.000000e+00 : f32
    %113 = vector.broadcast %cst_58 : f32 to vector<8x16xf32>
    %114 = arith.addf %113, %84 : vector<8x16xf32>
    %115 = arith.subf %114, %88 : vector<8x16xf32>
    %116 = arith.mulf %80, %80 : vector<8x16xf32>
    %117 = arith.subf %115, %116 : vector<8x16xf32>
    %118 = arith.addf %112, %117 : vector<8x16xf32>
    %cst_59 = arith.constant 1.000000e+00 : f32
    %119 = vector.broadcast %cst_59 : f32 to vector<8x16xf32>
    %120 = arith.addf %119, %85 : vector<8x16xf32>
    %121 = arith.subf %120, %89 : vector<8x16xf32>
    %122 = arith.mulf %81, %81 : vector<8x16xf32>
    %123 = arith.subf %121, %122 : vector<8x16xf32>
    %124 = arith.addf %118, %123 : vector<8x16xf32>
    %125 = vector.shape_cast %124 : vector<8x16xf32> to vector<1x8x16xf32>
    %cst_60 = arith.constant dense<0.000000e+00> : vector<1xf32>
    %126 = vector.multi_reduction <add>, %125, %cst_60 [1, 2] : vector<1x8x16xf32> to vector<1xf32>
    %127 = vector.shape_cast %126 : vector<1xf32> to vector<1x1x1xf32>
    %128 = vector.extract %127[0, 0, 0] : f32 from vector<1x1x1xf32>
    %129 = arith.subf %78, %80 : vector<8x16xf32>
    %130 = arith.mulf %86, %98 : vector<8x16xf32>
    %131 = arith.mulf %88, %92 : vector<8x16xf32>
    %132 = arith.addf %130, %131 : vector<8x16xf32>
    %133 = arith.mulf %129, %129 : vector<8x16xf32>
    %134 = arith.addf %92, %98 : vector<8x16xf32>
    %135 = arith.mulf %133, %134 : vector<8x16xf32>
    %136 = arith.addf %132, %135 : vector<8x16xf32>
    %cst_61 = arith.constant 2.000000e+00 : f32
    %137 = vector.broadcast %cst_61 : f32 to vector<8x16xf32>
    %138 = arith.subf %136, %137 : vector<8x16xf32>
    %139 = vector.shape_cast %138 : vector<8x16xf32> to vector<1x8x16xf32>
    %cst_62 = arith.constant dense<0.000000e+00> : vector<1xf32>
    %140 = vector.multi_reduction <add>, %139, %cst_62 [1, 2] : vector<1x8x16xf32> to vector<1xf32>
    %141 = vector.shape_cast %140 : vector<1xf32> to vector<1x1x1xf32>
    %142 = vector.extract %141[0, 0, 0] : f32 from vector<1x1x1xf32>
    %143 = arith.subf %79, %81 : vector<8x16xf32>
    %144 = arith.mulf %87, %101 : vector<8x16xf32>
    %145 = arith.mulf %89, %95 : vector<8x16xf32>
    %146 = arith.addf %144, %145 : vector<8x16xf32>
    %147 = arith.mulf %143, %143 : vector<8x16xf32>
    %148 = arith.addf %95, %101 : vector<8x16xf32>
    %149 = arith.mulf %147, %148 : vector<8x16xf32>
    %150 = arith.addf %146, %149 : vector<8x16xf32>
    %cst_63 = arith.constant 2.000000e+00 : f32
    %151 = vector.broadcast %cst_63 : f32 to vector<8x16xf32>
    %152 = arith.subf %150, %151 : vector<8x16xf32>
    %153 = vector.shape_cast %152 : vector<8x16xf32> to vector<1x8x16xf32>
    %cst_64 = arith.constant dense<0.000000e+00> : vector<1xf32>
    %154 = vector.multi_reduction <add>, %153, %cst_64 [1, 2] : vector<1x8x16xf32> to vector<1xf32>
    %155 = vector.shape_cast %154 : vector<1xf32> to vector<1x1x1xf32>
    %156 = vector.extract %155[0, 0, 0] : f32 from vector<1x1x1xf32>
    %157 = arith.subf %78, %79 : vector<8x16xf32>
    %158 = arith.mulf %86, %95 : vector<8x16xf32>
    %159 = arith.mulf %87, %92 : vector<8x16xf32>
    %160 = arith.addf %158, %159 : vector<8x16xf32>
    %161 = arith.mulf %157, %157 : vector<8x16xf32>
    %162 = arith.addf %92, %95 : vector<8x16xf32>
    %163 = arith.mulf %161, %162 : vector<8x16xf32>
    %164 = arith.addf %160, %163 : vector<8x16xf32>
    %cst_65 = arith.constant 2.000000e+00 : f32
    %165 = vector.broadcast %cst_65 : f32 to vector<8x16xf32>
    %166 = arith.subf %164, %165 : vector<8x16xf32>
    %167 = vector.shape_cast %166 : vector<8x16xf32> to vector<1x8x16xf32>
    %cst_66 = arith.constant dense<0.000000e+00> : vector<1xf32>
    %168 = vector.multi_reduction <add>, %167, %cst_66 [1, 2] : vector<1x8x16xf32> to vector<1xf32>
    %169 = vector.shape_cast %168 : vector<1xf32> to vector<1x1x1xf32>
    %170 = vector.extract %169[0, 0, 0] : f32 from vector<1x1x1xf32>
    %171 = arith.subf %80, %81 : vector<8x16xf32>
    %172 = arith.mulf %88, %101 : vector<8x16xf32>
    %173 = arith.mulf %89, %98 : vector<8x16xf32>
    %174 = arith.addf %172, %173 : vector<8x16xf32>
    %175 = arith.mulf %171, %171 : vector<8x16xf32>
    %176 = arith.addf %98, %101 : vector<8x16xf32>
    %177 = arith.mulf %175, %176 : vector<8x16xf32>
    %178 = arith.addf %174, %177 : vector<8x16xf32>
    %cst_67 = arith.constant 2.000000e+00 : f32
    %179 = vector.broadcast %cst_67 : f32 to vector<8x16xf32>
    %180 = arith.subf %178, %179 : vector<8x16xf32>
    %181 = vector.shape_cast %180 : vector<8x16xf32> to vector<1x8x16xf32>
    %cst_68 = arith.constant dense<0.000000e+00> : vector<1xf32>
    %182 = vector.multi_reduction <add>, %181, %cst_68 [1, 2] : vector<1x8x16xf32> to vector<1xf32>
    %183 = vector.shape_cast %182 : vector<1xf32> to vector<1x1x1xf32>
    %184 = vector.extract %183[0, 0, 0] : f32 from vector<1x1x1xf32>
    %c0_69 = arith.constant 0 : index
    %c0_70 = arith.constant 0 : index
    %185 = vector.load %arg17[%c0_69, %c0_70] : memref<8x1xf32, #tpu.memory_space<vmem>>, vector<8x1xf32>
    %c0_71 = arith.constant 0 : index
    %c0_72 = arith.constant 0 : index
    %186 = vector.load %arg18[%c0_71, %c0_72] : memref<8x1xf32, #tpu.memory_space<vmem>>, vector<8x1xf32>
    %c0_73 = arith.constant 0 : index
    %c0_74 = arith.constant 0 : index
    %187 = vector.load %arg19[%c0_73, %c0_74] : memref<8x1xf32, #tpu.memory_space<vmem>>, vector<8x1xf32>
    %c8_i32 = arith.constant 8 : i32
    %188 = arith.muli %arg0, %c8_i32 : i32
    %189 = tpu.iota {dimensions = array<i32: 0>} : vector<8x1xi32>
    %190 = vector.broadcast %188 : i32 to vector<8x1xi32>
    %191 = arith.addi %190, %189 : vector<8x1xi32>
    %c8_i32_75 = arith.constant 8 : i32
    %192 = vector.broadcast %c8_i32_75 : i32 to vector<8x1xi32>
    %193 = arith.cmpi slt, %191, %192 : vector<8x1xi32>
    %194 = arith.extui %193 : vector<8x1xi1> to vector<8x1xi32>
    %195 = arith.sitofp %194 : vector<8x1xi32> to vector<8x1xf32>
    %cst_76 = arith.constant 0.000000e+00 : f32
    %196 = vector.broadcast %cst_76 : f32 to vector<8x1xf32>
    %197 = arith.maximumf %185, %196 : vector<8x1xf32>
    %198 = arith.mulf %185, %187 : vector<8x1xf32>
    %199 = arith.subf %197, %198 : vector<8x1xf32>
    %200 = math.absf %185 : vector<8x1xf32>
    %cst_77 = arith.constant 0.000000e+00 : f32
    %201 = vector.broadcast %cst_77 : f32 to vector<8x1xf32>
    %202 = arith.subf %201, %200 : vector<8x1xf32>
    %203 = math.exp %202 : vector<8x1xf32>
    %204 = math.log1p %203 : vector<8x1xf32>
    %205 = arith.addf %199, %204 : vector<8x1xf32>
    %cst_78 = arith.constant 0.000000e+00 : f32
    %206 = vector.broadcast %cst_78 : f32 to vector<8x1xf32>
    %207 = arith.maximumf %186, %206 : vector<8x1xf32>
    %208 = arith.mulf %186, %187 : vector<8x1xf32>
    %209 = arith.subf %207, %208 : vector<8x1xf32>
    %210 = math.absf %186 : vector<8x1xf32>
    %cst_79 = arith.constant 0.000000e+00 : f32
    %211 = vector.broadcast %cst_79 : f32 to vector<8x1xf32>
    %212 = arith.subf %211, %210 : vector<8x1xf32>
    %213 = math.exp %212 : vector<8x1xf32>
    %214 = math.log1p %213 : vector<8x1xf32>
    %215 = arith.addf %209, %214 : vector<8x1xf32>
    %216 = arith.addf %205, %215 : vector<8x1xf32>
    %217 = arith.mulf %216, %195 : vector<8x1xf32>
    %218 = vector.shape_cast %217 : vector<8x1xf32> to vector<1x8x1xf32>
    %cst_80 = arith.constant dense<0.000000e+00> : vector<1xf32>
    %219 = vector.multi_reduction <add>, %218, %cst_80 [1, 2] : vector<1x8x1xf32> to vector<1xf32>
    %220 = vector.shape_cast %219 : vector<1xf32> to vector<1x1x1xf32>
    %221 = vector.extract %220[0, 0, 0] : f32 from vector<1x1x1xf32>
    %cst_81 = arith.constant 0.000000e+00 : f32
    %222 = vector.broadcast %cst_81 : f32 to vector<8x1xf32>
    %223 = arith.cmpf olt, %185, %222 : vector<8x1xf32>
    %cst_82 = arith.constant 0.000000e+00 : f32
    %cst_83 = arith.constant 1.000000e+00 : f32
    %224 = vector.broadcast %cst_82 : f32 to vector<8x1xf32>
    %225 = vector.broadcast %cst_83 : f32 to vector<8x1xf32>
    %226 = arith.select %223, %224, %225 : vector<8x1xi1>, vector<8x1xf32>
    %c0_84 = arith.constant 0 : index
    %c0_85 = arith.constant 0 : index
    %227 = vector.load %arg20[%c0_84, %c0_85] : memref<8x1xf32, #tpu.memory_space<vmem>>, vector<8x1xf32>
    tpu.vector_store %arg20[%c0_84, %c0_85], %226 {strides = array<i32>} : memref<8x1xf32, #tpu.memory_space<vmem>>, vector<8x1xf32>,
    %228 = tpu.iota {dimensions = array<i32: 1>} : vector<1x8x128xi32>
    %cst_86 = arith.constant 0.000000e+00 : f32
    %229 = vector.broadcast %cst_86 : f32 to vector<1x8x128xf32>
    %c0_i32 = arith.constant 0 : i32
    %230 = vector.broadcast %c0_i32 : i32 to vector<1x8x128xi32>
    %231 = arith.cmpi eq, %228, %230 : vector<1x8x128xi32>
    %232 = vector.broadcast %73 : f32 to vector<1x8x128xf32>
    %233 = arith.select %231, %232, %229 : vector<1x8x128xi1>, vector<1x8x128xf32>
    %c1_i32 = arith.constant 1 : i32
    %234 = vector.broadcast %c1_i32 : i32 to vector<1x8x128xi32>
    %235 = arith.cmpi eq, %228, %234 : vector<1x8x128xi32>
    %236 = vector.broadcast %77 : f32 to vector<1x8x128xf32>
    %237 = arith.select %235, %236, %233 : vector<1x8x128xi1>, vector<1x8x128xf32>
    %c2_i32 = arith.constant 2 : i32
    %238 = vector.broadcast %c2_i32 : i32 to vector<1x8x128xi32>
    %239 = arith.cmpi eq, %228, %238 : vector<1x8x128xi32>
    %240 = vector.broadcast %128 : f32 to vector<1x8x128xf32>
    %241 = arith.select %239, %240, %237 : vector<1x8x128xi1>, vector<1x8x128xf32>
    %c3_i32 = arith.constant 3 : i32
    %242 = vector.broadcast %c3_i32 : i32 to vector<1x8x128xi32>
    %243 = arith.cmpi eq, %228, %242 : vector<1x8x128xi32>
    %244 = vector.broadcast %221 : f32 to vector<1x8x128xf32>
    %245 = arith.select %243, %244, %241 : vector<1x8x128xi1>, vector<1x8x128xf32>
    %c4_i32 = arith.constant 4 : i32
    %246 = vector.broadcast %c4_i32 : i32 to vector<1x8x128xi32>
    %247 = arith.cmpi eq, %228, %246 : vector<1x8x128xi32>
    %248 = vector.broadcast %142 : f32 to vector<1x8x128xf32>
    %249 = arith.select %247, %248, %245 : vector<1x8x128xi1>, vector<1x8x128xf32>
    %c5_i32 = arith.constant 5 : i32
    %250 = vector.broadcast %c5_i32 : i32 to vector<1x8x128xi32>
    %251 = arith.cmpi eq, %228, %250 : vector<1x8x128xi32>
    %252 = vector.broadcast %156 : f32 to vector<1x8x128xf32>
    %253 = arith.select %251, %252, %249 : vector<1x8x128xi1>, vector<1x8x128xf32>
    %c6_i32 = arith.constant 6 : i32
    %254 = vector.broadcast %c6_i32 : i32 to vector<1x8x128xi32>
    %255 = arith.cmpi eq, %228, %254 : vector<1x8x128xi32>
    %256 = vector.broadcast %170 : f32 to vector<1x8x128xf32>
    %257 = arith.select %255, %256, %253 : vector<1x8x128xi1>, vector<1x8x128xf32>
    %c7_i32 = arith.constant 7 : i32
    %258 = vector.broadcast %c7_i32 : i32 to vector<1x8x128xi32>
    %259 = arith.cmpi eq, %228, %258 : vector<1x8x128xi32>
    %260 = vector.broadcast %184 : f32 to vector<1x8x128xf32>
    %261 = arith.select %259, %260, %257 : vector<1x8x128xi1>, vector<1x8x128xf32>
    %c0_87 = arith.constant 0 : index
    %c0_88 = arith.constant 0 : index
    %c0_89 = arith.constant 0 : index
    %262 = vector.load %arg21[%c0_87, %c0_88, %c0_89] : memref<1x8x128xf32, #tpu.memory_space<vmem>>, vector<1x8x128xf32>
    tpu.vector_store %arg21[%c0_87, %c0_88, %c0_89], %261 {strides = array<i32>} : memref<1x8x128xf32, #tpu.memory_space<vmem>>, vector<1x8x128xf32>,
    return
  }
  func.func @transform_0(%arg0: i32) -> (i32, i32) {
    %c0_i32 = arith.constant 0 : i32
    %c0_i32_0 = arith.constant 0 : i32
    return %arg0, %c0_i32 : i32, i32
  }
  func.func @transform_1(%arg0: i32) -> (i32, i32) {
    %c0_i32 = arith.constant 0 : i32
    %c0_i32_0 = arith.constant 0 : i32
    return %arg0, %c0_i32 : i32, i32
  }
  func.func @transform_2(%arg0: i32) -> (i32, i32) {
    %c0_i32 = arith.constant 0 : i32
    %c0_i32_0 = arith.constant 0 : i32
    return %arg0, %c0_i32 : i32, i32
  }
  func.func @transform_3(%arg0: i32) -> (i32, i32) {
    %c0_i32 = arith.constant 0 : i32
    %c0_i32_0 = arith.constant 0 : i32
    return %arg0, %c0_i32 : i32, i32
  }
  func.func @transform_4(%arg0: i32) -> (i32, i32) {
    %c0_i32 = arith.constant 0 : i32
    %c0_i32_0 = arith.constant 0 : i32
    return %arg0, %c0_i32 : i32, i32
  }
  func.func @transform_5(%arg0: i32) -> (i32, i32) {
    %c0_i32 = arith.constant 0 : i32
    %c0_i32_0 = arith.constant 0 : i32
    return %arg0, %c0_i32 : i32, i32
  }
  func.func @transform_6(%arg0: i32) -> (i32, i32) {
    %c0_i32 = arith.constant 0 : i32
    %c0_i32_0 = arith.constant 0 : i32
    return %arg0, %c0_i32 : i32, i32
  }
  func.func @transform_7(%arg0: i32) -> (i32, i32) {
    %c0_i32 = arith.constant 0 : i32
    %c0_i32_0 = arith.constant 0 : i32
    return %arg0, %c0_i32 : i32, i32
  }
  func.func @transform_8(%arg0: i32) -> (i32, i32) {
    %c0_i32 = arith.constant 0 : i32
    %c0_i32_0 = arith.constant 0 : i32
    return %arg0, %c0_i32 : i32, i32
  }
  func.func @transform_9(%arg0: i32) -> (i32, i32) {
    %c0_i32 = arith.constant 0 : i32
    %c0_i32_0 = arith.constant 0 : i32
    return %arg0, %c0_i32 : i32, i32
  }
  func.func @transform_10(%arg0: i32) -> (i32, i32) {
    %c0_i32 = arith.constant 0 : i32
    %c0_i32_0 = arith.constant 0 : i32
    return %arg0, %c0_i32 : i32, i32
  }
  func.func @transform_11(%arg0: i32) -> (i32, i32) {
    %c0_i32 = arith.constant 0 : i32
    %c0_i32_0 = arith.constant 0 : i32
    return %arg0, %c0_i32 : i32, i32
  }
  func.func @transform_12(%arg0: i32) -> (i32, i32) {
    %c0_i32 = arith.constant 0 : i32
    %c0_i32_0 = arith.constant 0 : i32
    return %arg0, %c0_i32 : i32, i32
  }
  func.func @transform_13(%arg0: i32) -> (i32, i32) {
    %c0_i32 = arith.constant 0 : i32
    %c0_i32_0 = arith.constant 0 : i32
    return %arg0, %c0_i32 : i32, i32
  }
  func.func @transform_14(%arg0: i32) -> (i32, i32) {
    %c0_i32 = arith.constant 0 : i32
    %c0_i32_0 = arith.constant 0 : i32
    return %arg0, %c0_i32 : i32, i32
  }
  func.func @transform_15(%arg0: i32) -> (i32, i32) {
    %c0_i32 = arith.constant 0 : i32
    %c0_i32_0 = arith.constant 0 : i32
    return %arg0, %c0_i32 : i32, i32
  }
  func.func @transform_16(%arg0: i32) -> (i32, i32) {
    %c0_i32 = arith.constant 0 : i32
    %c0_i32_0 = arith.constant 0 : i32
    return %arg0, %c0_i32 : i32, i32
  }
  func.func @transform_17(%arg0: i32) -> (i32, i32) {
    %c0_i32 = arith.constant 0 : i32
    %c0_i32_0 = arith.constant 0 : i32
    return %arg0, %c0_i32 : i32, i32
  }
  func.func @transform_18(%arg0: i32) -> (i32, i32) {
    %c0_i32 = arith.constant 0 : i32
    %c0_i32_0 = arith.constant 0 : i32
    return %arg0, %c0_i32 : i32, i32
  }
  func.func @transform_19(%arg0: i32) -> (i32, i32) {
    %c0_i32 = arith.constant 0 : i32
    %c0_i32_0 = arith.constant 0 : i32
    return %arg0, %c0_i32 : i32, i32
  }
  func.func @transform_20(%arg0: i32) -> (i32, i32, i32) {
    %c0_i32 = arith.constant 0 : i32
    %c0_i32_0 = arith.constant 0 : i32
    %c0_i32_1 = arith.constant 0 : i32
    return %arg0, %c0_i32, %c0_i32_0 : i32, i32, i32
  }
}

</mosaic_0001>

<bundles_post_ra>
// kernel: tpu_custom_call.1
= control target key start
LH: loop header
LB: loop body
LE: loop exit
PB: predicated region body
PF: predicated region fallthrough
CT: control target
= control target key end

     0   :  { %s861_s0 = inlined_call_operand.vmem [shape: f32[8,16], index: 0, kind: input, shape index: {}]   ;;  %s862_s1 = inlined_call_operand.vmem [shape: f32[8,16], index: 1, kind: input, shape index: {}]   ;;  %s863_s2 = inlined_call_operand.vmem [shape: f32[8,16], index: 2, kind: input, shape index: {}]   ;;  %s864_s3 = inlined_call_operand.vmem [shape: f32[8,16], index: 3, kind: input, shape index: {}]   ;;  %s865_s4 = inlined_call_operand.vmem [shape: f32[8,4], index: 4, kind: input, shape index: {}]   ;;  %s866_s5 = inlined_call_operand.vmem [shape: f32[8,4], index: 5, kind: input, shape index: {}]   ;;  %s867_s6 = inlined_call_operand.vmem [shape: f32[8,4], index: 6, kind: input, shape index: {}]   ;;  %s868_s7 = inlined_call_operand.vmem [shape: f32[8,4], index: 7, kind: input, shape index: {}]   ;;  %s869_s8 = inlined_call_operand.vmem [shape: f32[8,16], index: 8, kind: input, shape index: {}]   ;;  %s870_s9 = inlined_call_operand.vmem [shape: f32[8,16], index: 9, kind: input, shape index: {}]   ;;  %s871_s10 = inlined_call_operand.vmem [shape: f32[8,16], index: 10, kind: input, shape index: {}]   ;;  %s872_s11 = inlined_call_operand.vmem [shape: f32[8,16], index: 11, kind: input, shape index: {}]   ;;  %s873_s12 = inlined_call_operand.hbm [shape: f32[8,16], index: 12, kind: input, shape index: {}]   ;;  %s874_s13 = inlined_call_operand.vmem [shape: f32[8,16], index: 13, kind: input, shape index: {}]   ;;  %s875_s14 = inlined_call_operand.hbm [shape: f32[8,16], index: 14, kind: input, shape index: {}]   ;;  %s876_s15 = inlined_call_operand.hbm [shape: f32[8,16], index: 15, kind: input, shape index: {}]   ;;  %s877_s16 = inlined_call_operand.vmem [shape: f32[8,1], index: 16, kind: input, shape index: {}]   ;;  %s878_s17 = inlined_call_operand.vmem [shape: f32[8,1], index: 17, kind: input, shape index: {}]   ;;  %s879_s18 = inlined_call_operand.vmem [shape: f32[8,1], index: 18, kind: input, shape index: {}]   ;;  %s880_s19 = inlined_call_operand.vmem [shape: f32[8,1], index: 19, kind: output, shape index: {0}]   ;;  %s881_s20 = inlined_call_operand.hbm [shape: f32[1,8,128], index: 20, kind: output, shape index: {1}]  }
   0x1   :  { %882 = sst [smem:[#allocation12_spill]] %s861_s0 }
   0x2   :  { %883 = sst [smem:[#allocation13_spill]] %s862_s1 }
   0x3   :  { %884 = sst [smem:[#allocation14_spill]] %s863_s2 }
   0x4   :  { %885 = sst [smem:[#allocation15_spill]] %s864_s3 }
   0x5   :  { %886 = sst [smem:[#allocation16_spill]] %s865_s4 }
   0x6   :  { %26 = vsyncpa [#allocation3], 0 }
   0x7   :  { %27 = vsyncpa [#allocation6], 0  ;;  %s71_s23 = sshll.u32 %s875_s14, 4  ;;  %s72_s23 = int_to_ptr.hbm [resolvable:$true] %s71_s23 }
   0x8   :  { %28 = vsyncpa [#allocation4], 0  ;;  %s594_s24 = smov [#allocation5]   ;;  %s58_s26 = sshll.u32 %s873_s12, 4  ;;  %s59_s26 = int_to_ptr.hbm [resolvable:$true] %s58_s26 }
   0x9   :  { %s73_s2 = sshll.u32 %s594_s24, 4  ;;  %s595_s27 = smov [#allocation2]   ;;  %s74_s2 = int_to_ptr.vmem [resolvable:$true] %s73_s2 }
   0xa   :  { %76 = dma.hbm_to_vmem [thread:$0]  %s72_s23, 128, %s74_s2, [#allocation6]  }
   0xb   :  { %s60_s28 = sshll.u32 %s595_s27, 4  ;;  %s82_s30 = sshll.u32 %s876_s15, 4  ;;  %s61_s28 = int_to_ptr.vmem [resolvable:$true] %s60_s28  ;;  %s83_s30 = int_to_ptr.hbm [resolvable:$true] %s82_s30 }
   0xc   :  { %63 = dma.hbm_to_vmem [thread:$0]  %s59_s26, 128, %s61_s28, [#allocation3]  }
   0xd   :  { %s596_s14 = smov [#allocation7]  }
   0xe   :  { %s84_s0 = sshll.u32 %s596_s14, 4  ;;  %s85_s0 = int_to_ptr.vmem [resolvable:$true] %s84_s0 }
   0xf   :  { %87 = dma.hbm_to_vmem [thread:$0]  %s83_s30, 128, %s85_s0, [#allocation6]  }
  0x10   :  { %588 = dma.done.wait [#allocation3], 128  }
  0x11   :  { %589 = vsyncadd [#allocation3], 4294967168 }
  0x12   :  { %590 = dma.done.wait [#allocation6], 256  }
  0x13   :  { %591 = vsyncadd [#allocation6], 4294967040  ;;  %v186_v0 = vld [vmem:[%s869_s8] sm:$0xff]  ;;  %v721_v3 = vld [vmem:[#allocation5] sm:$0xff]  ;;  %s888_s26 = sld [smem:[#allocation14_spill]]  ;;  %vm164_vm0 = vcmask 130048  }
  0x14   :  { %v187_v1 = vld [vmem:[%s871_s10] sm:$0xff]  ;;  %v193_v7 = vld [vmem:[#allocation7] sm:$0xff]  ;;  %v216_v10 = vmul.f32 %v186_v0, %v186_v0  ;;  %s887_s10 = sld [smem:[#allocation12_spill]]  ;;  %v230_v24 = vmul.f32 %v721_v3, %v721_v3  ;;  %vm366_vm1 = vcmask 7168   ;;  %vm175_vm3 = vcmask 31744   ;;  %s598_s28 = smov [#allocation8]  }
  0x15   :  { %v719_v2 = vld [vmem:[#allocation2] sm:$0xff]  ;;  %v220_v11 = vmul.f32 %v187_v1, %v187_v1  ;;  %v200_v13 = vmul.f32 1.442695, %v193_v7  ;;  %v211_v17 = vsub.f32 0.0, %v193_v7  ;;  %s889_s4 = sld [smem:[#allocation13_spill]]  ;;  %v262_v28 = vsub.f32 %v187_v1, %v721_v3 }
  0x16   :  { %v190_v4 = vld [vmem:[%s870_s9] sm:$0xff]  ;;  %v225_v18 = vmul.f32 %v719_v2, %v719_v2  ;;  %v243_v22 = vsub.f32 %v186_v0, %v719_v2  ;;  %s890_s14 = sld [smem:[#allocation15_spill]]  ;;  %v228_v34 = vadd.f32 1.0, %v193_v7  ;;  %v281_v50 = vsub.f32 %v186_v0, %v187_v1 }
  0x17   :  { %v191_v5 = vld [vmem:[%s872_s11] sm:$0xff]  ;;  %v194_v8 = vmul.f32 1.442695, %v190_v4  ;;  %v202_v14 = vsub.f32 0.0, %v190_v4  ;;  %v212_v29 = vmul.f32 1.442695, %v211_v17  ;;  %v266_v43 = vmul.f32 %v262_v28, %v262_v28 }
  0x18   :  { %v192_v6 = vld [vmem:[%s874_s13] sm:$0xff]  ;;  %v196_v9 = vmul.f32 1.442695, %v191_v5  ;;  %v205_v15 = vsub.f32 0.0, %v191_v5  ;;  %v214_v30 = vadd.f32 1.0, %v190_v4  ;;  %v218_v31 = vadd.f32 1.0, %v191_v5 }
  0x19   :  { %v198_v12 = vmul.f32 1.442695, %v192_v6  ;;  %452 = vpow2.f32 %v194_v8  ;;  %v208_v16 = vsub.f32 0.0, %v192_v6  ;;  %v203_v19 = vmul.f32 1.442695, %v202_v14  ;;  %v743_v25 = vld [vmem:[%s888_s26] sm:$0xff] }
  0x1a   :  { %454 = vpow2.f32 %v196_v9  ;;  %v206_v20 = vmul.f32 1.442695, %v205_v15  ;;  %v106_v21 = vld [vmem:[%s887_s10] sm:$0xff]  ;;  %s891_s21 = sld [smem:[#allocation16_spill]]  ;;  %v223_v33 = vadd.f32 1.0, %v192_v6  ;;  %v116_v37 = vsub.f32 1.0, %v743_v25 }
  0x1b   :  { %456 = vpow2.f32 %v198_v12  ;;  %v209_v23 = vmul.f32 1.442695, %v208_v16  ;;  %v120_v26 = vld [vmem:[%s889_s4] sm:$0xff]  ;;  %v111_v35 = vsub.f32 1.0, %v106_v21  ;;  %v247_v44 = vmul.f32 %v243_v22, %v243_v22  ;;  %s412_s4 = sshll.u32 %s598_s28, 4  ;;  %s413_s4 = int_to_ptr.vmem [resolvable:$true] %s412_s4 }
  0x1c   :  { %v751_v27 = vld [vmem:[%s890_s14] sm:$0xff]  ;;  %458 = vpow2.f32 %v200_v13  ;;  %v125_v38 = vsub.f32 1.0, %v120_v26  ;;  %v788_v62 = vmul.f32 %v281_v50, %v281_v50  ;;  %s414_s14 = sshll.u32 %s881_s20, 4  ;;  %s415_s14 = int_to_ptr.hbm [resolvable:$true] %s414_s14 }
  0x1d   :  { %460 = vpow2.f32 %v203_v19  ;;  %v760_v36 = vld [vmem:[%s867_s6] sm:$0xff]  ;;  %v130_v39 = vsub.f32 1.0, %v751_v27 }
  0x1e   :  { %462 = vpow2.f32 %v206_v20  ;;  %v149_v40 = vld [vmem:[%s866_s5] sm:$0xff]  ;;  %v145_v49 = vsub.f32 1.0, %v760_v36 }
  0x1f   :  { %v770_v41 = vld [vmem:[%s868_s7] sm:$0xff]  ;;  %v453_v42 = vpop.eup %452  ;;  %464 = vpow2.f32 %v209_v23  ;;  %v154_v53 = vsub.f32 1.0, %v149_v40 }
  0x20   :  { %v135_v32 = vld [vmem:[%s891_s21] sm:$0xff]  ;;  %v455_v47 = vpop.eup %454  ;;  %466 = vpow2.f32 %v212_v29  ;;  %v215_v48 = vsub.f32 %v214_v30, %v453_v42  ;;  %v159_v54 = vsub.f32 1.0, %v770_v41 }
  0x21   :  { %v140_v45 = vsub.f32 1.0, %v135_v32  ;;  %v775_v46 = vld [vmem:[%s877_s16] sm:$0xff]  ;;  %v778_v51 = vpop.eup %456  ;;  %v219_v52 = vsub.f32 %v218_v31, %v455_v47  ;;  %468 = vlog2.f32 %v106_v21 }
  0x22   :  { %v781_v55 = vpop.eup %458  ;;  %v217_v56 = vsub.f32 %v215_v48, %v216_v10  ;;  %v224_v57 = vsub.f32 %v223_v33, %v778_v51  ;;  %470 = vlog2.f32 %v111_v35  ;;  %v333_v58 = vand.u32 2147483647, %v775_v46 }
  0x23   :  { %v785_v59 = vpop.eup %460  ;;  %v221_v60 = vsub.f32 %v219_v52, %v220_v11  ;;  %v229_v61 = vsub.f32 %v228_v34, %v781_v55  ;;  %472 = vlog2.f32 %v120_v26  ;;  %vm377_vm2 = vcmp.lt.f32.partialorder %v775_v46, 0.0 }
  0x24   :  { %v790_v63 = vpop.eup %462  ;;  %v226_v0 = vsub.f32 %v224_v57, %v225_v18  ;;  %474 = vlog2.f32 %v125_v38  ;;  %v245_v1 = vmul.f32 %v785_v59, %v778_v51  ;;  %v283_v4 = vmul.f32 %v785_v59, %v455_v47 }
  0x25   :  { %v795_v5 = vpop.eup %464  ;;  %v222_v6 = vadd.f32 %v221_v60, %v217_v56  ;;  %v231_v7 = vsub.f32 %v229_v61, %v230_v24  ;;  %v264_v8 = vmul.f32 %v790_v63, %v781_v55  ;;  %476 = vlog2.f32 %v135_v32 }
  0x26   :  { %v799_v9 = vpop.eup %466  ;;  %v244_v10 = vmul.f32 %v795_v5, %v453_v42  ;;  %v248_v11 = vadd.f32 %v795_v5, %v785_v59  ;;  %478 = vlog2.f32 %v140_v45  ;;  %v282_v12 = vmul.f32 %v790_v63, %v453_v42 }
  0x27   :  { %v469_v13 = vpop.eup %468  ;;  %v227_v14 = vadd.f32 %v226_v0, %v222_v6  ;;  %v263_v15 = vmul.f32 %v799_v9, %v455_v47  ;;  %v267_v16 = vadd.f32 %v799_v9, %v790_v63  ;;  %480 = vlog2.f32 %v149_v40 }
  0x28   :  { %v471_v17 = vpop.eup %470  ;;  %v109_v18 = vmul.f32 0.6931472, %v469_v13  ;;  %v246_v19 = vadd.f32 %v245_v1, %v244_v10  ;;  %v249_v20 = vmul.f32 %v248_v11, %v247_v44  ;;  %482 = vlog2.f32 %v154_v53 }
  0x29   :  { %v473_v21 = vpop.eup %472  ;;  %v232_v22 = vadd.f32 %v231_v7, %v227_v14  ;;  %v113_v23 = vmul.f32 0.6931472, %v471_v17  ;;  %v265_v24 = vadd.f32 %v264_v8, %v263_v15  ;;  %v268_v26 = vmul.f32 %v267_v16, %v266_v43 }
  0x2a   :  { %v475_v28 = vpop.eup %474  ;;  %v110_v29 = vmax.f32 %v109_v18, -100.0  ;;  %v123_v30 = vmul.f32 0.6931472, %v473_v21  ;;  %v250_v31 = vadd.f32 %v249_v20, %v246_v19  ;;  %v284_v32 = vadd.f32 %v283_v4, %v282_v12 }
  0x2b   :  { %v477_v33 = vpop.eup %476  ;;  %v233_v34 = vsel %vm164_vm0, %v232_v22, 0.0  ;;  %v114_v35 = vmax.f32 %v113_v23, -100.0  ;;  %v127_v38 = vmul.f32 0.6931472, %v475_v28  ;;  %v269_v40 = vadd.f32 %v268_v26, %v265_v24 }
  0x2c   :  { %v479_v42 = vpop.eup %478  ;;  %234 = vadd.xlane.f32.xlu1 %v233_v34  ;;  %v115_v44 = vmul.f32 %v110_v29, %v743_v25  ;;  %v124_v45 = vmax.f32 %v123_v30, -100.0  ;;  %v427_v47 = vadd.f32 -2.0, %v250_v31  ;;  %v138_v48 = vmul.f32 0.6931472, %v477_v33 }
  0x2d   :  { %v481_v50 = vpop.eup %480  ;;  %v117_v43 = vmul.f32 %v116_v37, %v114_v35  ;;  %v128_v52 = vmax.f32 %v127_v38, -100.0  ;;  %v428_v53 = vadd.f32 -2.0, %v269_v40  ;;  %v142_v56 = vmul.f32 0.6931472, %v479_v42 }
  0x2e   :  { %v483_v57 = vpop.eup %482  ;;  %v129_v60 = vmul.f32 %v124_v45, %v751_v27  ;;  %v252_v61 = vsel %vm164_vm0, %v427_v47, 0.0  ;;  %v139_v0 = vmax.f32 %v138_v48, -100.0  ;;  %v152_v1 = vmul.f32 0.6931472, %v481_v50  ;;  %v825_v27 = vld [vmem:[%s878_s17] sm:$0xff] }
  0x2f   :  { %v118_v4 = vadd.f32 %v117_v43, %v115_v44  ;;  %v131_v6 = vmul.f32 %v130_v39, %v128_v52  ;;  %v271_v7 = vsel %vm164_vm0, %v428_v53, 0.0  ;;  %v143_v8 = vmax.f32 %v142_v56, -100.0 }
  0x30   :  { %272 = vadd.xlane.f32.xlu2 %v271_v7  ;;  %v144_v25 = vmul.f32 %v139_v0, %v760_v36  ;;  %v153_v37 = vmax.f32 %v152_v1, -100.0  ;;  %v156_v10 = vmul.f32 0.6931472, %v483_v57  ;;  %v286_v11 = vadd.f32 %v790_v63, %v785_v59 }
  0x31   :  { %v119_v12 = vsub.f32 0.0, %v118_v4  ;;  %v132_v13 = vadd.f32 %v131_v6, %v129_v60  ;;  %v146_v14 = vmul.f32 %v145_v49, %v143_v8  ;;  %v334_v39 = vsub.f32 0.0, %v333_v58 }
  0x32   :  { %v157_v15 = vmax.f32 %v156_v10, -100.0  ;;  %v158_v16 = vmul.f32 %v153_v37, %v770_v41  ;;  %v287_v17 = vmul.f32 %v286_v11, %v788_v62  ;;  %v350_v19 = vand.u32 2147483647, %v825_v27 }
  0x33   :  { %v133_v18 = vsub.f32 0.0, %v132_v13  ;;  %v147_v59 = vadd.f32 %v146_v14, %v144_v25  ;;  %v335_v63 = vmul.f32 1.442695, %v334_v39  ;;  %v300_v24 = vsub.f32 %v719_v2, %v721_v3 }
  0x34   :  { %253 = vadd.xlane.f32.xlu1 %v252_v61  ;;  %v160_v36 = vmul.f32 %v159_v54, %v157_v15  ;;  %v288_v49 = vadd.f32 %v287_v17, %v284_v32  ;;  %v351_v23 = vsub.f32 0.0, %v350_v19  ;;  %v301_v41 = vmul.f32 %v799_v9, %v778_v51 }
  0x35   :  { %v134_v20 = vadd.f32 %v133_v18, %v119_v12  ;;  %v148_v21 = vsub.f32 0.0, %v147_v59  ;;  %484 = vpow2.f32 %v335_v63  ;;  %v597_v29 = vmov 1.0  }
  0x36   :  { %v161_v58 = vadd.f32 %v160_v36, %v158_v16  ;;  %v429_v22 = vadd.f32 -2.0, %v288_v49  ;;  %v352_v28 = vmul.f32 1.442695, %v351_v23  ;;  %v378_v30 = vsel %vm377_vm2, 0.0, %v597_v29 }
  0x37   :  { %v165_v62 = vsel %vm164_vm0, %v134_v20, 0.0  ;;  %379 = vst.msk [vmem:[%s880_s19] sm:$0xff] %vm366_vm1, %v378_v30  ;;  %v302_v31 = vmul.f32 %v795_v5, %v781_v55  ;;  %v304_v2 = vmul.f32 %v300_v24, %v300_v24  ;;  %v305_v3 = vadd.f32 %v799_v9, %v795_v5  ;;  %v321_v55 = vld [vmem:[%s879_s18] sm:$0xff] }
  0x38   :  { %166 = vadd.xlane.f32.xlu0 %v165_v62  ;;  %v162_v54 = vsub.f32 0.0, %v161_v58  ;;  %v290_v26 = vsel %vm164_vm0, %v429_v22, 0.0  ;;  %486 = vpow2.f32 %v352_v28  ;;  %v330_v50 = vmax.f32 %v775_v46, 0.0 }
  0x39   :  { %291 = vadd.xlane.f32.xlu2 %v290_v26  ;;  %v303_v33 = vadd.f32 %v302_v31, %v301_v41  ;;  %v306_v34 = vmul.f32 %v305_v3, %v304_v2  ;;  %v331_v43 = vmul.f32 %v321_v55, %v775_v46  ;;  %v347_v56 = vmax.f32 %v825_v27, 0.0 }
  0x3a   :  { %v163_v51 = vadd.f32 %v162_v54, %v148_v21  ;;  %v348_v61 = vmul.f32 %v321_v55, %v825_v27 }
  0x3b   :  { %v485_v32 = vpop.eup %484  ;;  %v307_v42 = vadd.f32 %v306_v34, %v303_v33  ;;  %v332_v4 = vsub.f32 %v330_v50, %v331_v43 }
  0x3c   :  { %v337_v35 = vadd.f32 1.0, %v485_v32  ;;  %v340_v38 = vmul.f32 -0.5, %v485_v32  ;;  %v176_v40 = vsel %vm175_vm3, %v163_v51, 0.0  ;;  %v343_v47 = vand.u32 2147483647, %v485_v32 }
  0x3d   :  { %v430_v48 = vadd.f32 -2.0, %v307_v42  ;;  %v349_v25 = vsub.f32 %v347_v56, %v348_v61 }
  0x3e   :  { %488 = vlog2.f32 %v337_v35  ;;  %v487_v44 = vpop.eup %486  ;;  %v341_v45 = vadd.f32 1.0, %v340_v38  ;;  %vm344_vm4 = vcmp.lt.f32.partialorder %v343_v47, 0.0004427343 }
  0x3f   :  { %v354_v5 = vadd.f32 1.0, %v487_v44  ;;  %v357_v9 = vmul.f32 -0.5, %v487_v44  ;;  %v360_v0 = vand.u32 2147483647, %v487_v44  ;;  %v309_v1 = vsel %vm164_vm0, %v430_v48, 0.0 }
  0x40   :  { %177 = vadd.xlane.f32.xlu0 %v176_v40  ;;  %v342_v53 = vmul.f32 %v485_v32, %v341_v45 }
  0x41   :  { %490 = vlog2.f32 %v354_v5  ;;  %v358_v57 = vadd.f32 1.0, %v357_v9  ;;  %vm361_vm5 = vcmp.lt.f32.partialorder %v360_v0, 0.0004427343 }
  0x43   :  { %v359_v7 = vmul.f32 %v487_v44, %v358_v57 }
  0x44   :  { %v489_v52 = vpop.eup %488 }
  0x45   :  { %v339_v60 = vmul.f32 0.6931472, %v489_v52 }
  0x47   :  { %v345_v6 = vsel %vm344_vm4, %v342_v53, %v339_v60  ;;  %v491_v8 = vpop.eup %490 }
  0x48   :  { %310 = vadd.xlane.f32.xlu0 %v309_v1  ;;  %v356_v46 = vmul.f32 0.6931472, %v491_v8  ;;  %v346_v37 = vadd.f32 %v345_v6, %v332_v4  ;;  %v323_v8 = vlaneseq }
  0x4a   :  { %v362_v10 = vsel %vm361_vm5, %v359_v7, %v356_v46 }
  0x4b   :  { %v363_v11 = vadd.f32 %v362_v10, %v349_v25  ;;  %v324_v25 = vshrl.u32 %v323_v8, 7 }
  0x4d   :  { %v364_v12 = vadd.f32 %v363_v11, %v346_v37  ;;  %vm380_vm6 = vcmp.eq.s32.totalorder %v324_v25, 0  ;;  %vm383_vm7 = vcmp.eq.s32.totalorder %v324_v25, 1  ;;  %vm386_vm8 = vcmp.eq.s32.totalorder %v324_v25, 2 }
  0x4e   :  { %vm389_vm9 = vcmp.eq.s32.totalorder %v324_v25, 3  ;;  %vm392_vm10 = vcmp.eq.s32.totalorder %v324_v25, 4  ;;  %vm395_vm11 = vcmp.eq.s32.totalorder %v324_v25, 5  ;;  %vm398_vm12 = vcmp.eq.s32.totalorder %v324_v25, 6 }
  0x4f   :  { %v367_v13 = vsel %vm366_vm1, %v364_v12, 0.0  ;;  %vm401_vm13 = vcmp.eq.s32.totalorder %v324_v25, 7 }
  0x50   :  { %368 = vadd.xlane.f32.xlu1 %v367_v13 }
  0x9f   :  { %v235_v14 = vpop.xlane.xlu1 %234 }
  0xa0   :  { %v236_v15 = vrot.slane %v235_v14, 4 }
  0xa2   :  { %v237_v19 = vadd.f32 %v236_v15, %v235_v14 }
  0xa3   :  { %v273_v27 = vpop.xlane.xlu2 %272 }
  0xa4   :  { %v274_v63 = vrot.slane %v273_v27, 4  ;;  %v238_v62 = vrot.slane %v237_v19, 2 }
  0xa6   :  { %v275_v22 = vadd.f32 %v274_v63, %v273_v27  ;;  %v239_v2 = vadd.f32 %v238_v62, %v237_v19 }
  0xa7   :  { %v254_v39 = vpop.xlane.xlu1 %253 }
  0xa8   :  { %v255_v18 = vrot.slane %v254_v39, 4  ;;  %v276_v29 = vrot.slane %v275_v22, 2  ;;  %v240_v38 = vrot.slane %v239_v2, 1 }
  0xaa   :  { %v256_v21 = vadd.f32 %v255_v18, %v254_v39  ;;  %v277_v33 = vadd.f32 %v276_v29, %v275_v22  ;;  %v241_v9 = vadd.f32 %v240_v38, %v239_v2 }
  0xab   :  { %v167_v16 = vpop.xlane.xlu0 %166 }
  0xac   :  { %v168_v17 = vrot.slane %v167_v16, 4  ;;  %v292_v59 = vpop.xlane.xlu2 %291  ;;  %v257_v41 = vrot.slane %v256_v21, 2  ;;  %v278_v45 = vrot.slane %v277_v33, 1 }
  0xad   :  { %v293_v36 = vrot.slane %v292_v59, 4 }
  0xae   :  { %v169_v49 = vadd.f32 %v168_v17, %v167_v16  ;;  %v258_v32 = vadd.f32 %v257_v41, %v256_v21  ;;  %v279_v52 = vadd.f32 %v278_v45, %v277_v33 }
  0xaf   :  { %v294_v58 = vadd.f32 %v293_v36, %v292_v59 }
  0xb0   :  { %v170_v20 = vrot.slane %v169_v49, 2  ;;  %v259_v44 = vrot.slane %v258_v32, 1 }
  0xb1   :  { %v295_v26 = vrot.slane %v294_v58, 2 }
  0xb2   :  { %v171_v23 = vadd.f32 %v170_v20, %v169_v49  ;;  %v260_v50 = vadd.f32 %v259_v44, %v258_v32 }
  0xb3   :  { %v178_v24 = vpop.xlane.xlu0 %177  ;;  %v296_v51 = vadd.f32 %v295_v26, %v294_v58 }
  0xb4   :  { %v179_v54 = vrot.slane %v178_v24, 4  ;;  %v172_v28 = vrot.slane %v171_v23, 1 }
  0xb5   :  { %v297_v55 = vrot.slane %v296_v51, 1 }
  0xb6   :  { %v180_v30 = vadd.f32 %v179_v54, %v178_v24  ;;  %v173_v31 = vadd.f32 %v172_v28, %v171_v23 }
  0xb7   :  { %v298_v43 = vadd.f32 %v297_v55, %v296_v51 }
  0xb8   :  { %v181_v3 = vrot.slane %v180_v30, 2  ;;  %431 = vpush %v173_v31 }
  0xba   :  { %v182_v34 = vadd.f32 %v181_v3, %v180_v30 }
  0xbb   :  { %v311_v35 = vpop.xlane.xlu0 %310 }
  0xbc   :  { %v312_v40 = vrot.slane %v311_v35, 4  ;;  %v183_v42 = vrot.slane %v182_v34, 1 }
  0xbe   :  { %v313_v47 = vadd.f32 %v312_v40, %v311_v35  ;;  %v184_v5 = vadd.f32 %v183_v42, %v182_v34 }
  0xc0   :  { %v314_v48 = vrot.slane %v313_v47, 2  ;;  %433 = vpush %v184_v5 }
  0xc1   :  { %435 = vpush %v241_v9 }
  0xc2   :  { %v315_v53 = vadd.f32 %v314_v48, %v313_v47  ;;  %437 = vpush %v260_v50 }
  0xc3   :  { %439 = vpush %v279_v52  ;;  %v369_v57 = vpop.xlane.xlu1 %368 }
  0xc4   :  { %441 = vpush %v298_v43  ;;  %v316_v56 = vrot.slane %v315_v53, 1  ;;  %v370_v60 = vrot.slane %v369_v57, 4 }
  0xc6   :  { %v317_v61 = vadd.f32 %v316_v56, %v315_v53  ;;  %v371_v0 = vadd.f32 %v370_v60, %v369_v57 }
  0xc8   :  { %443 = vpush %v317_v61  ;;  %v372_v1 = vrot.slane %v371_v0, 2 }
  0xca   :  { %v373_v4 = vadd.f32 %v372_v1, %v371_v0 }
  0xcc   :  { %v374_v6 = vrot.slane %v373_v4, 1 }
  0xce   :  { %v375_v7 = vadd.f32 %v374_v6, %v373_v4 }
  0xd0   :  { %445 = vpush %v375_v7 }
  0xe9   :  { %s432_s18 = spop %431 }
  0xea   :  { %v381_v46 = vstv %s432_s18 }
  0xeb   :  { %v382_v10 = vsel %vm380_vm6, %v381_v46, 0.0 }
  0xf1   :  { %s434_s8 = spop %433 }
  0xf2   :  { %s436_s9 = spop %435  ;;  %v384_v37 = vstv %s434_s8 }
  0xf3   :  { %s438_s10 = spop %437  ;;  %v385_v11 = vsel %vm383_vm7, %v384_v37, %v382_v10  ;;  %v387_v12 = vstv %s436_s9 }
  0xf4   :  { %s440_s11 = spop %439  ;;  %v388_v13 = vsel %vm386_vm8, %v387_v12, %v385_v11  ;;  %v393_v27 = vstv %s438_s10 }
  0xf5   :  { %s442_s13 = spop %441  ;;  %v396_v15 = vstv %s440_s11 }
  0xf6   :  { %v399_v17 = vstv %s442_s13 }
  0xf9   :  { %s444_s26 = spop %443 }
  0xfa   :  { %v402_v59 = vstv %s444_s26 }
 0x101   :  { %s446_s27 = spop %445 }
 0x102   :  { %v390_v14 = vstv %s446_s27 }
 0x103   :  { %v391_v39 = vsel %vm389_vm9, %v390_v14, %v388_v13 }
 0x104   :  { %v394_v16 = vsel %vm392_vm10, %v393_v27, %v391_v39 }
 0x105   :  { %v397_v18 = vsel %vm395_vm11, %v396_v15, %v394_v16 }
 0x106   :  { %v400_v63 = vsel %vm398_vm12, %v399_v17, %v397_v18 }
 0x107   :  { %v403_v36 = vsel %vm401_vm13, %v402_v59, %v400_v63 }
 0x108   :  { %404 = vst [vmem:[#allocation8] sm:$0xff] %v403_v36 }
 0x109   :  { %417 = dma.vmem_to_hbm [thread:$0]  %s413_s4, 128, %s415_s14, [#allocation4]  }
 0x10a   :  { %592 = dma.done.wait [#allocation4], 128  }
 0x10b   :  { %593 = vsyncadd [#allocation4], 4294967168 }
 0x10c   :  { %424 = vsyncpa [#allocation3], 1 }
 0x10d   :  { %425 = vsyncpa [#allocation6], 1 }
 0x10e   :  { %426 = vsyncpa [#allocation4], 1 }

</bundles_post_ra>
